<compile_context>
chip_gen: v7x
topology: tpu7x:2x2x1
jax: 0.10.0
libtpu: 0.0.40
codegen_flags: <defaults>
</compile_context>

<pallas_src>
import math
import functools

import numpy as np
import jax
import jax.numpy as jnp
from jax.experimental import pallas as pl
from jax.experimental.pallas import tpu as pltpu


def _round_up(v, m):
    return ((v + m - 1) // m) * m


def _vmem_limit_bytes():
    """Per-generation scoped-VMEM limit (v5e/v6e: 128 MiB phys, v7x: 64 MiB)."""
    try:
        cap = int(pltpu.get_tpu_info().vmem_capacity_bytes)
    except Exception:
        cap = 64 * 1024 * 1024          # conservative fallback (v7x physical VMEM)
    # leave headroom for double-buffered inputs + compiler scratch
    return max(32 * 1024 * 1024, min(cap - 16 * 1024 * 1024, 100 * 1024 * 1024))


# --------------------------------------------------------------------------
# Kernel 1: fused node projection   proj = x @ [Wq*s | Wk | Wv | Wskip] + b
#   output lane width = 4*D = 128 -> lane-dense, one MXU call instead of four.
# --------------------------------------------------------------------------

def _fused_proj_kernel(x_ref, w_ref, b_ref, o_ref):
    o_ref[...] = (
        jnp.dot(x_ref[...], w_ref[...], preferred_element_type=jnp.float32)
        + b_ref[...]
    )


def pallas_fused_projection(x, w, b, *, tile_m=256):
    m, k = x.shape
    n_out = w.shape[1]
    tile_m = min(tile_m, m)             # 128-aligned (v5e MXU) when m >= 256
    grid = (pl.cdiv(m, tile_m),)
    cost = pl.CostEstimate(
        flops=2 * m * k * n_out,
        transcendentals=0,
        bytes_accessed=4 * (m * k + k * n_out + n_out + m * n_out),
    )
    return pl.pallas_call(
        _fused_proj_kernel,
        out_shape=jax.ShapeDtypeStruct((m, n_out), jnp.float32),
        grid=grid,
        in_specs=[
            pl.BlockSpec((tile_m, k), lambda i: (i, 0)),
            pl.BlockSpec((k, n_out), lambda i: (0, 0)),
            pl.BlockSpec((1, n_out), lambda i: (0, 0)),
        ],
        out_specs=pl.BlockSpec((tile_m, n_out), lambda i: (i, 0)),
        compiler_params=pltpu.CompilerParams(
            dimension_semantics=("parallel",),      # megacore split on v7x
            vmem_limit_bytes=_vmem_limit_bytes(),
        ),
        cost_estimate=cost,
    )(x, w, b)


# --------------------------------------------------------------------------
# Kernel 2: fused time-encoding + edge projection + segment-softmax attention
#   grid = (dst-node tiles, edge blocks), edges sorted by dst.
#   Scalar-prefetched [blk_lo, blk_hi] per dst tile let us (a) clamp the edge
#   index_maps so skipped iterations re-use the resident block (no extra DMA)
#   and (b) pl.when-skip all compute for blocks with no edges in the tile.
#   Online softmax stats (running max / sum / weighted values) live in VMEM
#   scratch and persist along the (arbitrary) edge-block axis.
# --------------------------------------------------------------------------

def _attn_kernel(lo_ref, hi_ref,
                 dst_ref, t_ref, msg_ref, kg_ref, vg_ref,
                 q_ref, skip_ref,
                 tw_ref, tb_ref, wt_ref, wm_ref, pool_ref,
                 o_ref,
                 m_sc, l_sc, acc_sc,
                 *, tn):
    n = pl.program_id(0)
    e = pl.program_id(1)

    @pl.when(e == 0)
    def _init():
        m_sc[...] = jnp.full_like(m_sc, -1e30)
        l_sc[...] = jnp.zeros_like(l_sc)
        acc_sc[...] = jnp.zeros_like(acc_sc)

    @pl.when(jnp.logical_and(e >= lo_ref[n], e <= hi_ref[n]))
    def _accumulate():
        te = dst_ref.shape[0]
        pool = pool_ref[...]                                               # [D, H]

        # fused time encoding + edge projection (cos on EUP, matmuls on MXU)
        rel_t_enc = jnp.cos(t_ref[...] * tw_ref[...] + tb_ref[...])        # [te, T]
        ep = (jnp.dot(rel_t_enc, wt_ref[...], preferred_element_type=jnp.float32)
              + jnp.dot(msg_ref[...], wm_ref[...], preferred_element_type=jnp.float32))
        k = kg_ref[...] + ep                                               # [te, D]
        v = vg_ref[...] + ep                                               # [te, D]

        # one-hot dst mask restricted to THIS dst tile ([te, tn], not [E, N])
        base = n * tn
        dst = dst_ref[...]                                                 # [te, 1] i32
        node_ids = base + jax.lax.broadcasted_iota(jnp.int32, (te, tn), 1)
        mask = (dst == node_ids).astype(jnp.float32)                       # [te, tn]
        valid = jnp.logical_and(dst >= base, dst < base + tn)              # [te, 1]

        # q gathered in-kernel via the one-hot mask (1/sqrt(C) folded into Wq)
        q_e = jnp.dot(mask, q_ref[...], preferred_element_type=jnp.float32)   # [te, D]
        logits = jnp.dot(q_e * k, pool, preferred_element_type=jnp.float32)   # [te, H]
        logits = jnp.where(valid, logits, -1e30)

        # online softmax with a per-head block max (no per-head [E,N] temporaries)
        m_blk = jnp.max(logits, axis=0, keepdims=True)                     # [1, H]
        m_new = jnp.maximum(m_sc[...], m_blk)                              # [tn, H]
        alpha = jnp.exp(m_sc[...] - m_new)                                 # [tn, H]

        m_e = jnp.dot(mask, m_new, preferred_element_type=jnp.float32)     # [te, H]
        ex = jnp.exp(jnp.where(valid, logits - m_e, -1e30))                # [te, H]

        l_add = jax.lax.dot_general(mask, ex, (((0,), (0,)), ((), ())),
                                    preferred_element_type=jnp.float32)    # [tn, H]
        ex_full = jax.lax.dot_general(ex, pool, (((1,), (1,)), ((), ())),
                                      preferred_element_type=jnp.float32)  # [te, D]
        acc_add = jax.lax.dot_general(mask, ex_full * v, (((0,), (0,)), ((), ())),
                                      preferred_element_type=jnp.float32)  # [tn, D]
        alpha_full = jax.lax.dot_general(alpha, pool, (((1,), (1,)), ((), ())),
                                         preferred_element_type=jnp.float32)  # [tn, D]

        m_sc[...] = m_new
        l_sc[...] = alpha * l_sc[...] + l_add
        acc_sc[...] = alpha_full * acc_sc[...] + acc_add

    @pl.when(e == pl.num_programs(1) - 1)
    def _finalize():
        l_full = jax.lax.dot_general(l_sc[...], pool_ref[...],
                                     (((1,), (1,)), ((), ())),
                                     preferred_element_type=jnp.float32)   # [tn, D]
        # TODO(synk): present a lane-dense 128-wide output slab if D stays 32.
        o_ref[...] = skip_ref[...] + acc_sc[...] / jnp.maximum(l_full, 1e-30)


def pallas_attention(blk_lo, blk_hi, dst_s, t_s, msg_s, kg_s, vg_s, q_pad, skip_pad,
                     time_w, time_b, w_time, w_msg, pool, *, tn, te):
    n_pad, d = q_pad.shape
    e_pad = dst_s.shape[0]
    t_dim = time_w.shape[1]
    nwts = msg_s.shape[1]
    h = pool.shape[1]
    n_tiles = n_pad // tn
    e_blocks = e_pad // te

    def edge_map(ni, ei, lo_ref, hi_ref):
        # clamp skipped iterations to a boundary block -> no redundant re-fetch
        b = jnp.minimum(jnp.maximum(ei, lo_ref[ni]),
                        jnp.maximum(hi_ref[ni], lo_ref[ni]))
        return (b, 0)

    def node_map(ni, ei, lo_ref, hi_ref):
        return (ni, 0)

    def const_map(ni, ei, lo_ref, hi_ref):
        return (0, 0)

    cost = pl.CostEstimate(
        flops=2 * e_pad * (t_dim * d + nwts * d + tn * d + 3 * d * h + 2 * tn * h + tn * d)
              + 2 * n_pad * d * h,
        transcendentals=e_pad * (t_dim + 2 * h),
        bytes_accessed=4 * (e_pad * (2 * d + nwts + 2) + 3 * n_pad * d
                            + (t_dim + nwts) * d + d * h + 2 * t_dim),
    )

    kernel = functools.partial(_attn_kernel, tn=tn)
    grid_spec = pltpu.PrefetchScalarGridSpec(
        num_scalar_prefetch=2,
        grid=(n_tiles, e_blocks),
        in_specs=[
            pl.BlockSpec((te, 1), edge_map),        # dst   (sorted by dst)
            pl.BlockSpec((te, 1), edge_map),        # rel_t (sorted)
            pl.BlockSpec((te, nwts), edge_map),     # msg   (sorted)
            pl.BlockSpec((te, d), edge_map),        # k_nodes[src] (sorted)
            pl.BlockSpec((te, d), edge_map),        # v_nodes[src] (sorted)
            pl.BlockSpec((tn, d), node_map),        # q_nodes   (dst tile)
            pl.BlockSpec((tn, d), node_map),        # skip      (dst tile)
            pl.BlockSpec((1, t_dim), const_map),    # time_w
            pl.BlockSpec((1, t_dim), const_map),    # time_b
            pl.BlockSpec((t_dim, d), const_map),    # W_edge (time part)
            pl.BlockSpec((nwts, d), const_map),     # W_edge (msg part)
            pl.BlockSpec((d, h), const_map),        # head pooling matrix
        ],
        out_specs=pl.BlockSpec((tn, d), node_map),
        scratch_shapes=[
            pltpu.VMEM((tn, h), jnp.float32),       # running max
            pltpu.VMEM((tn, h), jnp.float32),       # running sum
            pltpu.VMEM((tn, d), jnp.float32),       # running weighted values
        ],
    )
    return pl.pallas_call(
        kernel,
        out_shape=jax.ShapeDtypeStruct((n_pad, d), jnp.float32),
        grid_spec=grid_spec,
        compiler_params=pltpu.CompilerParams(
            dimension_semantics=("parallel", "arbitrary"),
            vmem_limit_bytes=_vmem_limit_bytes(),
        ),
        cost_estimate=cost,
    )(blk_lo, blk_hi, dst_s, t_s, msg_s, kg_s, vg_s, q_pad, skip_pad,
      time_w, time_b, w_time, w_msg, pool)


# ------------------------------ model (glue) --------------------------------

def init_params(key, num_feats, embedding_dim, time_dim, nwts, heads):
    assert embedding_dim % heads == 0
    d = embedding_dim
    edge_dim = time_dim + nwts
    ks = jax.random.split(key, 11)
    scale = 0.1

    def w(k, shape):
        return scale * jax.random.normal(k, shape, dtype=jnp.float32)

    head_dim = d // heads
    pool = jnp.repeat(jnp.eye(heads, dtype=jnp.float32), head_dim, axis=0)   # [H*C, H]

    return {
        "time_w": w(ks[0], (1, time_dim)),
        "time_b": w(ks[1], (1, time_dim)),
        "Wq": w(ks[2], (num_feats, d)), "bq": w(ks[3], (1, d)),
        "Wk": w(ks[4], (num_feats, d)), "bk": w(ks[5], (1, d)),
        "Wv": w(ks[6], (num_feats, d)), "bv": w(ks[7], (1, d)),
        "Wskip": w(ks[8], (num_feats, d)), "bskip": w(ks[9], (1, d)),
        "Wedge": w(ks[10], (edge_dim, d)),      # PyG lin_edge has bias=False
        "pool": pool,
    }


def stgnn_prop_forward(params, x, edge_index, times, msg, *, heads,
                       tile_n=None, tile_e=None):
    """STGNN.forward for model_name='prop' (seen memory = given edges).

    Mirrors GraphAttentionEmbedding.forward with x=None, last_update=None,
    followed by TransformerConv (concat=True, root_weight=True, eval mode).
    """
    n_nodes, _ = x.shape
    d = params["Wq"].shape[1]
    head_dim = d // heads
    time_dim = params["time_w"].shape[1]
    scale = 1.0 / math.sqrt(head_dim)

    src = edge_index[0].astype(jnp.int32)
    dst = edge_index[1].astype(jnp.int32)
    num_edges = int(src.shape[0])

    # ---- kernel 1: fused node projection (lane-dense when 4*D == 128) ----
    w_all = jnp.concatenate(
        [params["Wq"] * scale, params["Wk"], params["Wv"], params["Wskip"]], axis=1)
    b_all = jnp.concatenate(
        [params["bq"] * scale, params["bk"], params["bv"], params["bskip"]], axis=1)
    proj = pallas_fused_projection(x, w_all, b_all)                       # [N, 4D]
    q_nodes = proj[:, 0 * d:1 * d]
    k_nodes = proj[:, 1 * d:2 * d]
    v_nodes = proj[:, 2 * d:3 * d]
    skip = proj[:, 3 * d:4 * d]

    # ---- sort edges by destination for the segment softmax ----
    order = jnp.argsort(dst)
    dst_s = dst[order]
    src_s = src[order]
    t_s = times[order].astype(jnp.float32).reshape(-1, 1)
    msg_s = msg[order].astype(jnp.float32)

    # per-edge source gathers stay in XLA glue.
    # TODO(synk): move these src gathers in-kernel via scalar-prefetched indices +
    # DMA row gather to drop the two [E, D] HBM round trips.
    k_g = jnp.take(k_nodes, src_s, axis=0)
    v_g = jnp.take(v_nodes, src_s, axis=0)

    # ---- tiling / padding ----
    tn = tile_n if tile_n is not None else min(256, _round_up(n_nodes, 8))
    te = tile_e if tile_e is not None else min(512, _round_up(num_edges, 8))
    assert tn % 8 == 0 and te % 8 == 0

    n_pad = _round_up(n_nodes, tn)
    e_pad = _round_up(num_edges, te)

    def pad_rows(a, rows, value=0):
        p = rows - a.shape[0]
        if p == 0:
            return a
        cfg = [(0, p)] + [(0, 0)] * (a.ndim - 1)
        return jnp.pad(a, cfg, constant_values=value)

    q_pad = pad_rows(q_nodes, n_pad)
    skip_pad = pad_rows(skip, n_pad)
    dst_pad = pad_rows(dst_s.reshape(-1, 1), e_pad, value=-1)   # -1: matches no node
    t_pad = pad_rows(t_s, e_pad)
    msg_pad = pad_rows(msg_s, e_pad)
    kg_pad = pad_rows(k_g, e_pad)
    vg_pad = pad_rows(v_g, e_pad)

    # per-dst-tile edge-block ranges (scalar-prefetched into SMEM)
    n_tiles = n_pad // tn
    tile_starts = jnp.arange(n_tiles, dtype=jnp.int32) * tn
    first = jnp.searchsorted(dst_s, tile_starts, side="left").astype(jnp.int32)
    last = jnp.searchsorted(dst_s, tile_starts + tn, side="left").astype(jnp.int32)
    has_edges = first < last
    blk_lo = jnp.where(has_edges, first // te, 0).astype(jnp.int32)
    blk_hi = jnp.where(has_edges, (last - 1) // te, -1).astype(jnp.int32)

    w_time = params["Wedge"][:time_dim]
    w_msg = params["Wedge"][time_dim:]

    z_pad = pallas_attention(
        blk_lo, blk_hi, dst_pad, t_pad, msg_pad, kg_pad, vg_pad, q_pad, skip_pad,
        params["time_w"], params["time_b"], w_time, w_msg, params["pool"],
        tn=tn, te=te)
    return z_pad[:n_nodes]


def reference_forward(params, x, edge_index, times, msg, *, heads):
    """Pure-JAX reference replicating the module math (for correctness check)."""
    n_nodes, _ = x.shape
    d = params["Wq"].shape[1]
    head_dim = d // heads
    src, dst = edge_index[0], edge_index[1]

    rel_t = times.astype(x.dtype).reshape(-1, 1)
    rel_t_enc = jnp.cos(rel_t @ params["time_w"] + params["time_b"])
    edge_attr = jnp.concatenate([rel_t_enc, msg.astype(x.dtype)], axis=-1)

    q_nodes = x @ params["Wq"] + params["bq"]
    k_nodes = x @ params["Wk"] + params["bk"]
    v_nodes = x @ params["Wv"] + params["bv"]
    skip = x @ params["Wskip"] + params["bskip"]
    edge_proj = edge_attr @ params["Wedge"]

    q_e = q_nodes[dst].reshape(-1, heads, head_dim)
    k_e = (k_nodes[src] + edge_proj).reshape(-1, heads, head_dim)
    v_e = (v_nodes[src] + edge_proj).reshape(-1, heads, head_dim)

    alpha = (q_e * k_e).sum(-1) / math.sqrt(head_dim)                 # [E, H]
    mask = (dst[:, None] == jnp.arange(n_nodes, dtype=dst.dtype)[None, :]).astype(jnp.float32)

    out = jnp.zeros((n_nodes, heads, head_dim), jnp.float32)
    for h in range(heads):
        a = alpha[:, h:h + 1]                                         # [E, 1]
        scores = jnp.where(mask > 0.0, a, -1e30)                      # [E, N]
        m = jnp.max(scores, axis=0, keepdims=True)
        p = jnp.exp(scores - m) * mask
        s = jnp.sum(p, axis=0, keepdims=True)
        p = p / jnp.maximum(s, 1e-30)                                 # [E, N]
        out = out.at[:, h, :].set(p.T @ v_e[:, h, :])
    return out.reshape(n_nodes, d) + skip


# ----------------------------------- main ------------------------------------

if __name__ == "__main__":
    # Small shapes consistent with the module's constructor.
    num_nodes = 16        # N
    num_feats = 8         # F
    embedding_dim = 32    # D  (4*D = 128 -> lane-dense fused projection)
    heads = 8             # TransformerConv heads (fixed in GraphAttentionEmbedding)
    time_dim = 16         # TimeEncoder output channels
    nwts = 1              # msg_dim

    key = jax.random.PRNGKey(0)
    k_x, k_pe, k_ne, k_pw, k_nw, k_params = jax.random.split(key, 6)

    x = jax.random.normal(k_x, (num_nodes, num_feats), dtype=jnp.float32)

    # "seen" memory: pos/neg edge streams concatenated (as update_memory would do).
    n_pos, n_neg = 8, 4
    pos_edge_index = jax.random.randint(k_pe, (2, n_pos), 0, num_nodes, dtype=jnp.int32)
    neg_edge_index = jax.random.randint(k_ne, (2, n_neg), 0, num_nodes, dtype=jnp.int32)
    pos_times = jnp.arange(n_pos, dtype=jnp.int32)
    neg_times = jnp.arange(n_neg, dtype=jnp.int32) + n_pos
    pos_weights = jax.random.normal(k_pw, (n_pos, nwts), dtype=jnp.float32)
    neg_weights = jax.random.normal(k_nw, (n_neg, nwts), dtype=jnp.float32)

    seen_ei = jnp.concatenate([pos_edge_index, neg_edge_index], axis=1)      # [2, E]
    seen_times = jnp.concatenate([pos_times, neg_times], axis=0)             # [E]
    seen_weights = jnp.concatenate([pos_weights, neg_weights], axis=0)       # [E, nwts]

    params = init_params(k_params, num_feats, embedding_dim, time_dim, nwts, heads)

    # tile_n / tile_e chosen small so the toy example exercises the multi-tile
    # (dst-tile x edge-block) grid, the block-range skipping and online softmax.
    z = stgnn_prop_forward(params, x, seen_ei, seen_times, seen_weights,
                           heads=heads, tile_n=8, tile_e=8)
    z = jax.block_until_ready(z)

    z_ref = reference_forward(params, x, seen_ei, seen_times, seen_weights, heads=heads)
    np.testing.assert_allclose(np.asarray(z), np.asarray(z_ref), rtol=2e-3, atol=2e-3)

    assert z.shape == (num_nodes, embedding_dim)
    print("KERNEL_OK")
</pallas_src>

<mosaic_0001>
module attributes {stable_mosaic.version = 11 : i64} {
  func.func @_fused_proj_kernel(%arg0: i32, %arg1: memref<16x8xf32, #tpu.memory_space<vmem>>, %arg2: memref<8x128xf32, #tpu.memory_space<vmem>>, %arg3: memref<1x128xf32, #tpu.memory_space<vmem>>, %arg4: memref<16x128xf32, #tpu.memory_space<vmem>>) attributes {dimension_semantics = [#tpu.dimension_semantics<parallel>], iteration_bounds = array<i64: 1>, scalar_prefetch = 0 : i64, scratch_operands = 0 : i64, tpu.core_type = #tpu.core_type<tc>, window_params = [{transform_indices = @transform_0, window_bounds = array<i64: 16, 8>}, {pipeline_mode = #tpu.pipeline_mode<synchronous>, transform_indices = @transform_1, window_bounds = array<i64: 8, 128>}, {pipeline_mode = #tpu.pipeline_mode<synchronous>, transform_indices = @transform_2, window_bounds = array<i64: 1, 128>}, {transform_indices = @transform_3, window_bounds = array<i64: 16, 128>}]} {
    %c0 = arith.constant 0 : index
    %c0_0 = arith.constant 0 : index
    %0 = vector.load %arg1[%c0, %c0_0] : memref<16x8xf32, #tpu.memory_space<vmem>>, vector<16x8xf32>
    %c0_1 = arith.constant 0 : index
    %c0_2 = arith.constant 0 : index
    %1 = vector.load %arg2[%c0_1, %c0_2] : memref<8x128xf32, #tpu.memory_space<vmem>>, vector<8x128xf32>
    %cst = arith.constant dense<0.000000e+00> : vector<16x128xf32>
    %2 = tpu.matmul %0, %1, %cst {dimension_numbers = #tpu.dot_dimension_numbers<[1], [0], [0], [1], [0, 0, 1, 1], [], []>} : vector<16x8xf32>, vector<8x128xf32>, vector<16x128xf32> -> vector<16x128xf32>
    %c0_3 = arith.constant 0 : index
    %c0_4 = arith.constant 0 : index
    %3 = vector.load %arg3[%c0_3, %c0_4] : memref<1x128xf32, #tpu.memory_space<vmem>>, vector<1x128xf32>
    %4 = vector.broadcast %3 : vector<1x128xf32> to vector<16x128xf32>
    %5 = arith.addf %2, %4 : vector<16x128xf32>
    %c0_5 = arith.constant 0 : index
    %c0_6 = arith.constant 0 : index
    %6 = vector.load %arg4[%c0_5, %c0_6] : memref<16x128xf32, #tpu.memory_space<vmem>>, vector<16x128xf32>
    tpu.vector_store %arg4[%c0_5, %c0_6], %5 {strides = array<i32>} : memref<16x128xf32, #tpu.memory_space<vmem>>, vector<16x128xf32>,
    return
  }
  func.func @transform_0(%arg0: i32) -> (i32, i32) {
    %c0_i32 = arith.constant 0 : i32
    %c0_i32_0 = arith.constant 0 : i32
    return %arg0, %c0_i32 : i32, i32
  }
  func.func @transform_1(%arg0: i32) -> (i32, i32) {
    %c0_i32 = arith.constant 0 : i32
    %c0_i32_0 = arith.constant 0 : i32
    %c0_i32_1 = arith.constant 0 : i32
    return %c0_i32, %c0_i32_0 : i32, i32
  }
  func.func @transform_2(%arg0: i32) -> (i32, i32) {
    %c0_i32 = arith.constant 0 : i32
    %c0_i32_0 = arith.constant 0 : i32
    %c0_i32_1 = arith.constant 0 : i32
    return %c0_i32, %c0_i32_0 : i32, i32
  }
  func.func @transform_3(%arg0: i32) -> (i32, i32) {
    %c0_i32 = arith.constant 0 : i32
    %c0_i32_0 = arith.constant 0 : i32
    return %arg0, %c0_i32 : i32, i32
  }
}

</mosaic_0001>

<bundles_post_ra>
// kernel: tpu_custom_call.1
= control target key start
LH: loop header
LB: loop body
LE: loop exit
PB: predicated region body
PF: predicated region fallthrough
CT: control target
= control target key end

     0   :  { %vm25_vm0 = vcmask 64512   ;;  %s210_s0 = inlined_call_operand.vmem [shape: f32[16,8], index: 0, kind: input, shape index: {}]   ;;  %s211_s1 = inlined_call_operand.vmem [shape: f32[8,128], index: 1, kind: input, shape index: {}]   ;;  %s212_s2 = inlined_call_operand.vmem [shape: f32[1,128], index: 2, kind: input, shape index: {}]   ;;  %s213_s3 = inlined_call_operand.hbm [shape: f32[16,128], index: 3, kind: output, shape index: {}]  }
   0x1   :  { %v17_v0 = vld [vmem:[%s211_s1] sm:$0xff]  ;;  %v16_v2 = vld [vmem:[%s210_s0 + $0x8] sm:$0xff] }
   0x2   :  { %v15_v1 = vld [vmem:[%s210_s0] sm:$0xff]  ;;  %131 = vmatprep.subr.mxu0 %v17_v0 }
   0x3   :  { %133 = vmatprep.mubr.msk.f32.mxu0 %vm25_vm0, %v15_v1 }
   0x4   :  { %8 = vsyncpa [#allocation3], 0  ;;  %132 = vmatpush3.msra.mxu0 %v17_v0  ;;  %v125_v3 = vld [vmem:[%s212_s2] ss:$0 sm:$0xff]  ;;  %s163_s20 = smov [#allocation2]  }
   0x5   :  { %134 = vmatmul.mubr.msk.f32.vlgmr.msra.gmra.mrb[0].mxu0 %vm25_vm0, %v16_v2  ;;  %s114_s1 = sshll.u32 %s163_s20, 4  ;;  %s115_s1 = int_to_ptr.vmem [resolvable:$true] %s114_s1 }
   0x6   :  { %s139_s21 = scalar_lea.vmem %s115_s1, 256  ;;  %p144_p1 = scmp.lt.s32.totalorder %s115_s1, %s115_s1 }
   0x7   :  { %p140_p0 = scmp.ne.s32.totalorder %s115_s1, %s139_s21  ;;  %p145_p2 = scmp.lt.s32.totalorder %s139_s21, %s139_s21 }
   0x9   :  { %p146_p3 = por %p145_p2, %p144_p1 }
   0xb   :  { %p147_p4 = pnand %p146_p3, %p140_p0 }
  0xd8   :  { %v135_v4 = vpop.f32.mrb[0].mxu0 }
  0xd9   :  { %v104_v5 = vadd.f32 %v135_v4, %v125_v3  ;;  %v98_v6 = vpop.f32.mrb[1].mxu0 }
  0xda   :  { %v99_v7 = vadd.f32 %v125_v3, %v98_v6 }
  0xdb   :  { %108 = vst [vmem:[#allocation2 + $0x8] sm:$0xff] %v104_v5 }
  0xdc   :  { %107 = vst [vmem:[#allocation2] sm:$0xff] %v99_v7 }
  0xdd   :  { %150 = shalt.err (!%p147_p4)
}
  0xde   :  { %s151_s2 = scalar_lea.hbm %s213_s3, 256 }
  0xdf   :  { %p152_p5 = scmp.ne.s32.totalorder %s213_s3, %s151_s2  ;;  %p155_p6 = scmp.lt.u32.totalorder %s151_s2, %s213_s3 }
  0xe1   :  { %p157_p7 = pnand %p155_p6, %p152_p5 }
  0xe3   :  { %160 = shalt.err (!%p157_p7)
}
  0xe4   :  { %s164_s27 = smov 128   ;;  %s165_s28 = smov 8  }
  0xe5   :  { %120 = dma.vmem_to_hbm [thread:$0]  %s115_s1, 256, %s213_s3, [#allocation3], %s164_s27, %s164_s27, %s165_s28  }
  0xe6   :  { %161 = dma.done.wait [#allocation3], 256  }
  0xe7   :  { %162 = vsyncadd [#allocation3], 4294967040 }
  0xe8   :  { %124 = vsyncpa [#allocation3], 1 }

</bundles_post_ra>
